<compile_context>
chip_gen: v7x
topology: tpu7x:2x2x1
jax: 0.10.0
libtpu: 0.0.40
codegen_flags: <defaults>
</compile_context>

<pallas_src>
import jax
import jax.numpy as jnp
from jax.experimental import pallas as pl
from jax.experimental.pallas import tpu as pltpu


# ----------------------------- kernel helpers ------------------------------

def _nan_to_num(v, posinf, neginf):
    v = jnp.where(jnp.isnan(v), 0.0, v)
    v = jnp.where(v == jnp.inf, posinf, v)
    v = jnp.where(v == -jnp.inf, neginf, v)
    return v


def _softplus(v):
    # numerically stable softplus (only used on a width-1 lane slice)
    return jnp.maximum(v, 0.0) + jnp.log1p(jnp.exp(-jnp.abs(v)))


def _mish(h):
    # mish(h) = h * tanh(softplus(h)).
    # Single-exp form: with e = exp(h), tanh(ln(1+e)) = ((1+e)^2-1)/((1+e)^2+1).
    # Clamp the exp argument at 20: for h >= 20 the ratio is 1 to f32 precision,
    # so this matches the exact mish while avoiding overflow.
    e = jnp.exp(jnp.minimum(h, 20.0))
    n = (1.0 + e) * (1.0 + e)
    return h * (n - 1.0) * pl.reciprocal(n + 1.0, approx=True)


def _round_up(n, m):
    return ((n + m - 1) // m) * m


# --------------------------------- kernel ----------------------------------

def kelly_kernel(
    # tiled inputs
    x_ref, fr_ref,
    # shared trunk: Linear(D,128) (bf16 weight) + LayerNorm(128)
    w1_ref, b1_ref, g_ref, be_ref,
    # fused head layer 1: [128,192] (bf16) = [wmu1 | ws1 | wa1], bias [1,192]
    wh1_ref, bh1_ref,
    # fused head layer 2: block-diagonal [192,8] f32, bias [1,8]
    wh2_ref, bh2_ref,
    # size head: Linear(3,32) + Linear(32,1)
    wz1_ref, bz1_ref, wz2_ref, bz2_ref,
    # packed output [TB, 4] = [position, mu, risk, alpha]
    out_ref,
):
    x = x_ref[...].astype(jnp.float32)
    x = _nan_to_num(x, 5.0, -5.0)

    fr = fr_ref[...].astype(jnp.float32)
    fr = _nan_to_num(fr, 1.0, -1.0)
    fr = jnp.clip(fr, -5.0, 5.0)

    # ---- shared trunk: Linear -> LayerNorm -> Mish (Dropout = identity) ----
    h = jnp.dot(x.astype(jnp.bfloat16), w1_ref[...],
                preferred_element_type=jnp.float32) + b1_ref[...]
    mean = jnp.mean(h, axis=-1, keepdims=True)
    var = jnp.mean((h - mean) ** 2, axis=-1, keepdims=True)
    h = (h - mean) * jax.lax.rsqrt(var + 1e-5)
    h = h * g_ref[...] + be_ref[...]
    shared = _mish(h)                                     # [TB, 128] f32

    # ---- fused head first layers: one [TB,128] @ [128,192] matmul ----------
    h1 = _mish(jnp.dot(shared.astype(jnp.bfloat16), wh1_ref[...],
                       preferred_element_type=jnp.float32) + bh1_ref[...])

    # ---- fused head second layers: block-diagonal [192,8] ------------------
    # lane 0 = mu_raw, lane 1 = sigma_raw, lane 2 = alpha_raw, lanes 3..7 = 0
    z = jnp.dot(h1, wh2_ref[...],
                preferred_element_type=jnp.float32) + bh2_ref[...]

    mu = jnp.clip(z[:, 0:1], -5.0, 5.0)
    sigma_sq = jnp.clip(_softplus(z[:, 1:2]) + 1e-6, 1e-6, 100.0)
    alpha = jnp.tanh(z[:, 2:3])

    kelly = jnp.clip(mu / sigma_sq, -5.0, 5.0)
    funding_adj = jnp.clip(alpha * fr, -5.0, 5.0)

    # ---- size head: cat([kelly, sigma_sq, funding_adj]) @ W(3,32) ----------
    # Expressed as a sum of rank-1 broadcasts (avoids a width-3 lane concat).
    wz1 = wz1_ref[...]                                    # [3, 32]
    hz = (kelly * wz1[0:1, :]
          + sigma_sq * wz1[1:2, :]
          + funding_adj * wz1[2:3, :]
          + bz1_ref[...])
    hz = _mish(hz)
    pos = jnp.tanh(jnp.dot(hz, wz2_ref[...],
                           preferred_element_type=jnp.float32) + bz2_ref[...])

    # ---- single packed store: [TB, 4] ---------------------------------------
    out_ref[...] = jnp.concatenate(
        [pos, mu, jnp.sqrt(sigma_sq), alpha], axis=-1)


# -------------------------------- wrapper -----------------------------------

def neural_kelly_head(x, funding_rate, params, *, tile_b=512):
    B, D = x.shape
    if funding_rate is None:
        # PyTorch None path: funding_adj = 0, equivalent to funding_rate == 0.
        funding_rate = jnp.zeros((B, 1), jnp.float32)

    # --- fuse head weights (once per call, on device) ------------------------
    wh1 = jnp.concatenate([params["wmu1"], params["ws1"], params["wa1"]], axis=1)
    bh1 = jnp.concatenate([params["bmu1"], params["bs1"], params["ba1"]], axis=1)
    wh2 = jnp.zeros((192, 8), jnp.float32)
    wh2 = wh2.at[0:64, 0:1].set(params["wmu2"])
    wh2 = wh2.at[64:128, 1:2].set(params["ws2"])
    wh2 = wh2.at[128:192, 2:3].set(params["wa2"])
    bh2 = jnp.zeros((1, 8), jnp.float32)
    bh2 = bh2.at[:, 0:1].set(params["bmu2"])
    bh2 = bh2.at[:, 1:2].set(params["bs2"])
    bh2 = bh2.at[:, 2:3].set(params["ba2"])

    # bf16 inputs for the two MXU-heavy matmuls; accumulation stays f32.
    w1_bf = params["w1"].astype(jnp.bfloat16)
    wh1_bf = wh1.astype(jnp.bfloat16)

    # --- batch tiling ---------------------------------------------------------
    # TB<=512 keeps the working set well under the 32 MiB scoped-VMEM default
    # (safe on v5e/v6e/v7x) while reaching large-tile pipelining efficiency.
    TB = min(tile_b, _round_up(B, 8))
    B_pad = _round_up(B, TB)
    if B_pad != B:
        x = jnp.pad(x, ((0, B_pad - B), (0, 0)))
        funding_rate = jnp.pad(funding_rate, ((0, B_pad - B), (0, 0)))
    grid = (B_pad // TB,)

    weights = (w1_bf, params["b1"], params["ln_g"], params["ln_b"],
               wh1_bf, bh1, wh2, bh2,
               params["wz1"], params["bz1"], params["wz2"], params["bz2"])

    def _resident(a):
        nd = a.ndim
        return pl.BlockSpec(a.shape, lambda i, _nd=nd: (0,) * _nd)

    in_specs = (
        [pl.BlockSpec((TB, D), lambda i: (i, 0)),
         pl.BlockSpec((TB, 1), lambda i: (i, 0))]
        + [_resident(w) for w in weights]
    )

    flops_per_row = 2 * (D * 128 + 128 * 192 + 192 * 8 + 3 * 32 + 32)
    cost = pl.CostEstimate(
        flops=int(B_pad * flops_per_row),
        transcendentals=int(B_pad * (2 * (128 + 192 + 32) + 8)),
        bytes_accessed=int(
            x.size * 4 + funding_rate.size * 4 + B_pad * 4 * 4
            + sum(int(w.size) * w.dtype.itemsize for w in weights)),
    )

    out = pl.pallas_call(
        kelly_kernel,
        out_shape=jax.ShapeDtypeStruct((B_pad, 4), jnp.float32),
        grid=grid,
        in_specs=in_specs,
        out_specs=pl.BlockSpec((TB, 4), lambda i: (i, 0)),
        compiler_params=pltpu.CompilerParams(
            dimension_semantics=("parallel",),
            vmem_limit_bytes=32 * 1024 * 1024,
        ),
        cost_estimate=cost,
    )(x, funding_rate, *weights)

    out = out[:B]
    return {
        "position_size": out[:, 0:1],
        "expected_return": out[:, 1:2],
        "expected_risk": out[:, 2:3],
        "funding_sensitivity": out[:, 3:4],
    }


# --------------------------- deterministic params ---------------------------

def _linear_init(key, fan_in, fan_out):
    # PyTorch-style uniform(-1/sqrt(fan_in), 1/sqrt(fan_in)) init.
    kw, kb = jax.random.split(key)
    bound = 1.0 / jnp.sqrt(jnp.float32(fan_in))
    w = jax.random.uniform(kw, (fan_in, fan_out), jnp.float32, -bound, bound)
    b = jax.random.uniform(kb, (1, fan_out), jnp.float32, -bound, bound)
    return w, b


def make_params(input_dim, key):
    keys = jax.random.split(key, 9)
    p = {}
    p["w1"], p["b1"] = _linear_init(keys[0], input_dim, 128)
    p["ln_g"] = jnp.ones((1, 128), jnp.float32)
    p["ln_b"] = jnp.zeros((1, 128), jnp.float32)
    p["wmu1"], p["bmu1"] = _linear_init(keys[1], 128, 64)
    p["wmu2"], p["bmu2"] = _linear_init(keys[2], 64, 1)
    p["ws1"], p["bs1"] = _linear_init(keys[3], 128, 64)
    p["ws2"], p["bs2"] = _linear_init(keys[4], 64, 1)
    p["wa1"], p["ba1"] = _linear_init(keys[5], 128, 64)
    p["wa2"], p["ba2"] = _linear_init(keys[6], 64, 1)
    p["wz1"], p["bz1"] = _linear_init(keys[7], 3, 32)
    p["wz2"], p["bz2"] = _linear_init(keys[8], 32, 1)
    return p


if __name__ == "__main__":
    B, D = 8, 32
    root = jax.random.PRNGKey(0)
    k_x, k_fr, k_p = jax.random.split(root, 3)

    x = jax.random.normal(k_x, (B, D), jnp.float32)
    # inject some non-finite values to exercise the nan_to_num path
    x = x.at[0, 0].set(jnp.nan).at[1, 1].set(jnp.inf).at[2, 2].set(-jnp.inf)
    funding_rate = 0.01 * jax.random.normal(k_fr, (B, 1), jnp.float32)

    params = make_params(D, k_p)

    out = neural_kelly_head(x, funding_rate, params)
    out = jax.tree_util.tree_map(jax.block_until_ready, out)

    assert out["position_size"].shape == (B, 1)
    assert out["expected_return"].shape == (B, 1)
    assert out["expected_risk"].shape == (B, 1)
    assert out["funding_sensitivity"].shape == (B, 1)
    assert all(bool(jnp.all(jnp.isfinite(v))) for v in out.values())
    print("KERNEL_OK")
</pallas_src>

<mosaic_0001>
module attributes {stable_mosaic.version = 11 : i64} {
  func.func @kelly_kernel(%arg0: i32, %arg1: memref<8x32xf32, #tpu.memory_space<vmem>>, %arg2: memref<8x1xf32, #tpu.memory_space<vmem>>, %arg3: memref<32x128xbf16, #tpu.memory_space<vmem>>, %arg4: memref<1x128xf32, #tpu.memory_space<vmem>>, %arg5: memref<1x128xf32, #tpu.memory_space<vmem>>, %arg6: memref<1x128xf32, #tpu.memory_space<vmem>>, %arg7: memref<128x192xbf16, #tpu.memory_space<vmem>>, %arg8: memref<1x192xf32, #tpu.memory_space<vmem>>, %arg9: memref<192x8xf32, #tpu.memory_space<vmem>>, %arg10: memref<1x8xf32, #tpu.memory_space<vmem>>, %arg11: memref<3x32xf32, #tpu.memory_space<vmem>>, %arg12: memref<1x32xf32, #tpu.memory_space<vmem>>, %arg13: memref<32x1xf32, #tpu.memory_space<vmem>>, %arg14: memref<1x1xf32, #tpu.memory_space<vmem>>, %arg15: memref<8x4xf32, #tpu.memory_space<vmem>>) attributes {dimension_semantics = [#tpu.dimension_semantics<parallel>], iteration_bounds = array<i64: 1>, scalar_prefetch = 0 : i64, scratch_operands = 0 : i64, tpu.core_type = #tpu.core_type<tc>, window_params = [{transform_indices = @transform_0, window_bounds = array<i64: 8, 32>}, {transform_indices = @transform_1, window_bounds = array<i64: 8, 1>}, {pipeline_mode = #tpu.pipeline_mode<synchronous>, transform_indices = @transform_2, window_bounds = array<i64: 32, 128>}, {pipeline_mode = #tpu.pipeline_mode<synchronous>, transform_indices = @transform_3, window_bounds = array<i64: 1, 128>}, {pipeline_mode = #tpu.pipeline_mode<synchronous>, transform_indices = @transform_4, window_bounds = array<i64: 1, 128>}, {pipeline_mode = #tpu.pipeline_mode<synchronous>, transform_indices = @transform_5, window_bounds = array<i64: 1, 128>}, {pipeline_mode = #tpu.pipeline_mode<synchronous>, transform_indices = @transform_6, window_bounds = array<i64: 128, 192>}, {pipeline_mode = #tpu.pipeline_mode<synchronous>, transform_indices = @transform_7, window_bounds = array<i64: 1, 192>}, {pipeline_mode = #tpu.pipeline_mode<synchronous>, transform_indices = @transform_8, window_bounds = array<i64: 192, 8>}, {pipeline_mode = #tpu.pipeline_mode<synchronous>, transform_indices = @transform_9, window_bounds = array<i64: 1, 8>}, {pipeline_mode = #tpu.pipeline_mode<synchronous>, transform_indices = @transform_10, window_bounds = array<i64: 3, 32>}, {pipeline_mode = #tpu.pipeline_mode<synchronous>, transform_indices = @transform_11, window_bounds = array<i64: 1, 32>}, {pipeline_mode = #tpu.pipeline_mode<synchronous>, transform_indices = @transform_12, window_bounds = array<i64: 32, 1>}, {pipeline_mode = #tpu.pipeline_mode<synchronous>, transform_indices = @transform_13, window_bounds = array<i64: 1, 1>}, {transform_indices = @transform_14, window_bounds = array<i64: 8, 4>}]} {
    %c0 = arith.constant 0 : index
    %c0_0 = arith.constant 0 : index
    %0 = vector.load %arg1[%c0, %c0_0] : memref<8x32xf32, #tpu.memory_space<vmem>>, vector<8x32xf32>
    %1 = arith.cmpf one, %0, %0 : vector<8x32xf32>
    %cst = arith.constant 0.000000e+00 : f32
    %2 = vector.broadcast %cst : f32 to vector<8x32xf32>
    %3 = arith.select %1, %2, %0 : vector<8x32xi1>, vector<8x32xf32>
    %cst_1 = arith.constant 0x7F800000 : f32
    %4 = vector.broadcast %cst_1 : f32 to vector<8x32xf32>
    %5 = arith.cmpf oeq, %3, %4 : vector<8x32xf32>
    %cst_2 = arith.constant 5.000000e+00 : f32
    %6 = vector.broadcast %cst_2 : f32 to vector<8x32xf32>
    %7 = arith.select %5, %6, %3 : vector<8x32xi1>, vector<8x32xf32>
    %cst_3 = arith.constant 0xFF800000 : f32
    %8 = vector.broadcast %cst_3 : f32 to vector<8x32xf32>
    %9 = arith.cmpf oeq, %7, %8 : vector<8x32xf32>
    %cst_4 = arith.constant -5.000000e+00 : f32
    %10 = vector.broadcast %cst_4 : f32 to vector<8x32xf32>
    %11 = arith.select %9, %10, %7 : vector<8x32xi1>, vector<8x32xf32>
    %c0_5 = arith.constant 0 : index
    %c0_6 = arith.constant 0 : index
    %12 = vector.load %arg2[%c0_5, %c0_6] : memref<8x1xf32, #tpu.memory_space<vmem>>, vector<8x1xf32>
    %13 = arith.cmpf one, %12, %12 : vector<8x1xf32>
    %cst_7 = arith.constant 0.000000e+00 : f32
    %14 = vector.broadcast %cst_7 : f32 to vector<8x1xf32>
    %15 = arith.select %13, %14, %12 : vector<8x1xi1>, vector<8x1xf32>
    %cst_8 = arith.constant 0x7F800000 : f32
    %16 = vector.broadcast %cst_8 : f32 to vector<8x1xf32>
    %17 = arith.cmpf oeq, %15, %16 : vector<8x1xf32>
    %cst_9 = arith.constant 1.000000e+00 : f32
    %18 = vector.broadcast %cst_9 : f32 to vector<8x1xf32>
    %19 = arith.select %17, %18, %15 : vector<8x1xi1>, vector<8x1xf32>
    %cst_10 = arith.constant 0xFF800000 : f32
    %20 = vector.broadcast %cst_10 : f32 to vector<8x1xf32>
    %21 = arith.cmpf oeq, %19, %20 : vector<8x1xf32>
    %cst_11 = arith.constant -1.000000e+00 : f32
    %22 = vector.broadcast %cst_11 : f32 to vector<8x1xf32>
    %23 = arith.select %21, %22, %19 : vector<8x1xi1>, vector<8x1xf32>
    %cst_12 = arith.constant -5.000000e+00 : f32
    %cst_13 = arith.constant 5.000000e+00 : f32
    %24 = vector.broadcast %cst_12 : f32 to vector<8x1xf32>
    %25 = arith.maximumf %24, %23 : vector<8x1xf32>
    %26 = vector.broadcast %cst_13 : f32 to vector<8x1xf32>
    %27 = arith.minimumf %26, %25 : vector<8x1xf32>
    %28 = arith.truncf %11 : vector<8x32xf32> to vector<8x32xbf16>
    %c0_14 = arith.constant 0 : index
    %c0_15 = arith.constant 0 : index
    %29 = vector.load %arg3[%c0_14, %c0_15] : memref<32x128xbf16, #tpu.memory_space<vmem>>, vector<32x128xbf16>
    %cst_16 = arith.constant dense<0.000000e+00> : vector<8x128xf32>
    %30 = tpu.matmul %28, %29, %cst_16 {dimension_numbers = #tpu.dot_dimension_numbers<[1], [0], [0], [1], [0, 0, 1, 1], [], []>} : vector<8x32xbf16>, vector<32x128xbf16>, vector<8x128xf32> -> vector<8x128xf32>
    %c0_17 = arith.constant 0 : index
    %c0_18 = arith.constant 0 : index
    %31 = vector.load %arg4[%c0_17, %c0_18] : memref<1x128xf32, #tpu.memory_space<vmem>>, vector<1x128xf32>
    %32 = vector.broadcast %31 : vector<1x128xf32> to vector<8x128xf32>
    %33 = arith.addf %30, %32 : vector<8x128xf32>
    %cst_19 = arith.constant dense<0.000000e+00> : vector<8xf32>
    %34 = vector.multi_reduction <add>, %33, %cst_19 [1] : vector<8x128xf32> to vector<8xf32>
    %35 = vector.shape_cast %34 : vector<8xf32> to vector<8x1xf32>
    %cst_20 = arith.constant 1.280000e+02 : f32
    %36 = vector.broadcast %cst_20 : f32 to vector<8x1xf32>
    %37 = arith.divf %35, %36 : vector<8x1xf32>
    %38 = vector.broadcast %37 : vector<8x1xf32> to vector<8x128xf32>
    %39 = arith.subf %33, %38 : vector<8x128xf32>
    %40 = arith.mulf %39, %39 : vector<8x128xf32>
    %cst_21 = arith.constant dense<0.000000e+00> : vector<8xf32>
    %41 = vector.multi_reduction <add>, %40, %cst_21 [1] : vector<8x128xf32> to vector<8xf32>
    %42 = vector.shape_cast %41 : vector<8xf32> to vector<8x1xf32>
    %cst_22 = arith.constant 1.280000e+02 : f32
    %43 = vector.broadcast %cst_22 : f32 to vector<8x1xf32>
    %44 = arith.divf %42, %43 : vector<8x1xf32>
    %45 = vector.broadcast %37 : vector<8x1xf32> to vector<8x128xf32>
    %46 = arith.subf %33, %45 : vector<8x128xf32>
    %cst_23 = arith.constant 9.99999974E-6 : f32
    %47 = vector.broadcast %cst_23 : f32 to vector<8x1xf32>
    %48 = arith.addf %44, %47 : vector<8x1xf32>
    %49 = math.rsqrt %48 : vector<8x1xf32>
    %50 = vector.broadcast %49 : vector<8x1xf32> to vector<8x128xf32>
    %51 = arith.mulf %46, %50 : vector<8x128xf32>
    %c0_24 = arith.constant 0 : index
    %c0_25 = arith.constant 0 : index
    %52 = vector.load %arg5[%c0_24, %c0_25] : memref<1x128xf32, #tpu.memory_space<vmem>>, vector<1x128xf32>
    %53 = vector.broadcast %52 : vector<1x128xf32> to vector<8x128xf32>
    %54 = arith.mulf %51, %53 : vector<8x128xf32>
    %c0_26 = arith.constant 0 : index
    %c0_27 = arith.constant 0 : index
    %55 = vector.load %arg6[%c0_26, %c0_27] : memref<1x128xf32, #tpu.memory_space<vmem>>, vector<1x128xf32>
    %56 = vector.broadcast %55 : vector<1x128xf32> to vector<8x128xf32>
    %57 = arith.addf %54, %56 : vector<8x128xf32>
    %cst_28 = arith.constant 2.000000e+01 : f32
    %58 = vector.broadcast %cst_28 : f32 to vector<8x128xf32>
    %59 = arith.minimumf %57, %58 : vector<8x128xf32>
    %60 = math.exp %59 : vector<8x128xf32>
    %cst_29 = arith.constant 1.000000e+00 : f32
    %61 = vector.broadcast %cst_29 : f32 to vector<8x128xf32>
    %62 = arith.addf %61, %60 : vector<8x128xf32>
    %cst_30 = arith.constant 1.000000e+00 : f32
    %63 = vector.broadcast %cst_30 : f32 to vector<8x128xf32>
    %64 = arith.addf %63, %60 : vector<8x128xf32>
    %65 = arith.mulf %62, %64 : vector<8x128xf32>
    %cst_31 = arith.constant 1.000000e+00 : f32
    %66 = vector.broadcast %cst_31 : f32 to vector<8x128xf32>
    %67 = arith.subf %65, %66 : vector<8x128xf32>
    %68 = arith.mulf %57, %67 : vector<8x128xf32>
    %cst_32 = arith.constant 1.000000e+00 : f32
    %69 = vector.broadcast %cst_32 : f32 to vector<8x128xf32>
    %70 = arith.addf %65, %69 : vector<8x128xf32>
    %71 = tpu.reciprocal %70 {approx = true} : vector<8x128xf32> -> vector<8x128xf32>
    %72 = arith.mulf %68, %71 : vector<8x128xf32>
    %73 = arith.truncf %72 : vector<8x128xf32> to vector<8x128xbf16>
    %c0_33 = arith.constant 0 : index
    %c0_34 = arith.constant 0 : index
    %74 = vector.load %arg7[%c0_33, %c0_34] : memref<128x192xbf16, #tpu.memory_space<vmem>>, vector<128x192xbf16>
    %cst_35 = arith.constant dense<0.000000e+00> : vector<8x192xf32>
    %75 = tpu.matmul %73, %74, %cst_35 {dimension_numbers = #tpu.dot_dimension_numbers<[1], [0], [0], [1], [0, 0, 1, 1], [], []>} : vector<8x128xbf16>, vector<128x192xbf16>, vector<8x192xf32> -> vector<8x192xf32>
    %c0_36 = arith.constant 0 : index
    %c0_37 = arith.constant 0 : index
    %76 = vector.load %arg8[%c0_36, %c0_37] : memref<1x192xf32, #tpu.memory_space<vmem>>, vector<1x192xf32>
    %77 = vector.broadcast %76 : vector<1x192xf32> to vector<8x192xf32>
    %78 = arith.addf %75, %77 : vector<8x192xf32>
    %cst_38 = arith.constant 2.000000e+01 : f32
    %79 = vector.broadcast %cst_38 : f32 to vector<8x192xf32>
    %80 = arith.minimumf %78, %79 : vector<8x192xf32>
    %81 = math.exp %80 : vector<8x192xf32>
    %cst_39 = arith.constant 1.000000e+00 : f32
    %82 = vector.broadcast %cst_39 : f32 to vector<8x192xf32>
    %83 = arith.addf %82, %81 : vector<8x192xf32>
    %cst_40 = arith.constant 1.000000e+00 : f32
    %84 = vector.broadcast %cst_40 : f32 to vector<8x192xf32>
    %85 = arith.addf %84, %81 : vector<8x192xf32>
    %86 = arith.mulf %83, %85 : vector<8x192xf32>
    %cst_41 = arith.constant 1.000000e+00 : f32
    %87 = vector.broadcast %cst_41 : f32 to vector<8x192xf32>
    %88 = arith.subf %86, %87 : vector<8x192xf32>
    %89 = arith.mulf %78, %88 : vector<8x192xf32>
    %cst_42 = arith.constant 1.000000e+00 : f32
    %90 = vector.broadcast %cst_42 : f32 to vector<8x192xf32>
    %91 = arith.addf %86, %90 : vector<8x192xf32>
    %92 = tpu.reciprocal %91 {approx = true} : vector<8x192xf32> -> vector<8x192xf32>
    %93 = arith.mulf %89, %92 : vector<8x192xf32>
    %c0_43 = arith.constant 0 : index
    %c0_44 = arith.constant 0 : index
    %94 = vector.load %arg9[%c0_43, %c0_44] : memref<192x8xf32, #tpu.memory_space<vmem>>, vector<192x8xf32>
    %cst_45 = arith.constant dense<0.000000e+00> : vector<8x8xf32>
    %95 = tpu.matmul %93, %94, %cst_45 {dimension_numbers = #tpu.dot_dimension_numbers<[1], [0], [0], [1], [0, 0, 1, 1], [], []>} : vector<8x192xf32>, vector<192x8xf32>, vector<8x8xf32> -> vector<8x8xf32>
    %c0_46 = arith.constant 0 : index
    %c0_47 = arith.constant 0 : index
    %96 = vector.load %arg10[%c0_46, %c0_47] : memref<1x8xf32, #tpu.memory_space<vmem>>, vector<1x8xf32>
    %97 = vector.broadcast %96 : vector<1x8xf32> to vector<8x8xf32>
    %98 = arith.addf %95, %97 : vector<8x8xf32>
    %99 = vector.extract_strided_slice %98 {offsets = [0, 0], sizes = [8, 1], strides = [1, 1]} : vector<8x8xf32> to vector<8x1xf32>
    %cst_48 = arith.constant -5.000000e+00 : f32
    %cst_49 = arith.constant 5.000000e+00 : f32
    %100 = vector.broadcast %cst_48 : f32 to vector<8x1xf32>
    %101 = arith.maximumf %100, %99 : vector<8x1xf32>
    %102 = vector.broadcast %cst_49 : f32 to vector<8x1xf32>
    %103 = arith.minimumf %102, %101 : vector<8x1xf32>
    %104 = vector.extract_strided_slice %98 {offsets = [0, 1], sizes = [8, 1], strides = [1, 1]} : vector<8x8xf32> to vector<8x1xf32>
    %cst_50 = arith.constant 0.000000e+00 : f32
    %105 = vector.broadcast %cst_50 : f32 to vector<8x1xf32>
    %106 = arith.maximumf %104, %105 : vector<8x1xf32>
    %107 = math.absf %104 : vector<8x1xf32>
    %cst_51 = arith.constant 0.000000e+00 : f32
    %108 = vector.broadcast %cst_51 : f32 to vector<8x1xf32>
    %109 = arith.subf %108, %107 : vector<8x1xf32>
    %110 = math.exp %109 : vector<8x1xf32>
    %111 = math.log1p %110 : vector<8x1xf32>
    %112 = arith.addf %106, %111 : vector<8x1xf32>
    %cst_52 = arith.constant 9.99999997E-7 : f32
    %113 = vector.broadcast %cst_52 : f32 to vector<8x1xf32>
    %114 = arith.addf %112, %113 : vector<8x1xf32>
    %cst_53 = arith.constant 9.99999997E-7 : f32
    %cst_54 = arith.constant 1.000000e+02 : f32
    %115 = vector.broadcast %cst_53 : f32 to vector<8x1xf32>
    %116 = arith.maximumf %115, %114 : vector<8x1xf32>
    %117 = vector.broadcast %cst_54 : f32 to vector<8x1xf32>
    %118 = arith.minimumf %117, %116 : vector<8x1xf32>
    %119 = vector.extract_strided_slice %98 {offsets = [0, 2], sizes = [8, 1], strides = [1, 1]} : vector<8x8xf32> to vector<8x1xf32>
    %120 = math.tanh %119 : vector<8x1xf32>
    %121 = arith.divf %103, %118 : vector<8x1xf32>
    %cst_55 = arith.constant -5.000000e+00 : f32
    %cst_56 = arith.constant 5.000000e+00 : f32
    %122 = vector.broadcast %cst_55 : f32 to vector<8x1xf32>
    %123 = arith.maximumf %122, %121 : vector<8x1xf32>
    %124 = vector.broadcast %cst_56 : f32 to vector<8x1xf32>
    %125 = arith.minimumf %124, %123 : vector<8x1xf32>
    %126 = arith.mulf %120, %27 : vector<8x1xf32>
    %cst_57 = arith.constant -5.000000e+00 : f32
    %cst_58 = arith.constant 5.000000e+00 : f32
    %127 = vector.broadcast %cst_57 : f32 to vector<8x1xf32>
    %128 = arith.maximumf %127, %126 : vector<8x1xf32>
    %129 = vector.broadcast %cst_58 : f32 to vector<8x1xf32>
    %130 = arith.minimumf %129, %128 : vector<8x1xf32>
    %c0_59 = arith.constant 0 : index
    %c0_60 = arith.constant 0 : index
    %131 = vector.load %arg11[%c0_59, %c0_60] : memref<3x32xf32, #tpu.memory_space<vmem>>, vector<3x32xf32>
    %132 = vector.extract_strided_slice %131 {offsets = [0, 0], sizes = [1, 32], strides = [1, 1]} : vector<3x32xf32> to vector<1x32xf32>
    %133 = vector.broadcast %125 : vector<8x1xf32> to vector<8x32xf32>
    %134 = vector.broadcast %132 : vector<1x32xf32> to vector<8x32xf32>
    %135 = arith.mulf %133, %134 : vector<8x32xf32>
    %136 = vector.extract_strided_slice %131 {offsets = [1, 0], sizes = [1, 32], strides = [1, 1]} : vector<3x32xf32> to vector<1x32xf32>
    %137 = vector.broadcast %118 : vector<8x1xf32> to vector<8x32xf32>
    %138 = vector.broadcast %136 : vector<1x32xf32> to vector<8x32xf32>
    %139 = arith.mulf %137, %138 : vector<8x32xf32>
    %140 = arith.addf %135, %139 : vector<8x32xf32>
    %141 = vector.extract_strided_slice %131 {offsets = [2, 0], sizes = [1, 32], strides = [1, 1]} : vector<3x32xf32> to vector<1x32xf32>
    %142 = vector.broadcast %130 : vector<8x1xf32> to vector<8x32xf32>
    %143 = vector.broadcast %141 : vector<1x32xf32> to vector<8x32xf32>
    %144 = arith.mulf %142, %143 : vector<8x32xf32>
    %145 = arith.addf %140, %144 : vector<8x32xf32>
    %c0_61 = arith.constant 0 : index
    %c0_62 = arith.constant 0 : index
    %146 = vector.load %arg12[%c0_61, %c0_62] : memref<1x32xf32, #tpu.memory_space<vmem>>, vector<1x32xf32>
    %147 = vector.broadcast %146 : vector<1x32xf32> to vector<8x32xf32>
    %148 = arith.addf %145, %147 : vector<8x32xf32>
    %cst_63 = arith.constant 2.000000e+01 : f32
    %149 = vector.broadcast %cst_63 : f32 to vector<8x32xf32>
    %150 = arith.minimumf %148, %149 : vector<8x32xf32>
    %151 = math.exp %150 : vector<8x32xf32>
    %cst_64 = arith.constant 1.000000e+00 : f32
    %152 = vector.broadcast %cst_64 : f32 to vector<8x32xf32>
    %153 = arith.addf %152, %151 : vector<8x32xf32>
    %cst_65 = arith.constant 1.000000e+00 : f32
    %154 = vector.broadcast %cst_65 : f32 to vector<8x32xf32>
    %155 = arith.addf %154, %151 : vector<8x32xf32>
    %156 = arith.mulf %153, %155 : vector<8x32xf32>
    %cst_66 = arith.constant 1.000000e+00 : f32
    %157 = vector.broadcast %cst_66 : f32 to vector<8x32xf32>
    %158 = arith.subf %156, %157 : vector<8x32xf32>
    %159 = arith.mulf %148, %158 : vector<8x32xf32>
    %cst_67 = arith.constant 1.000000e+00 : f32
    %160 = vector.broadcast %cst_67 : f32 to vector<8x32xf32>
    %161 = arith.addf %156, %160 : vector<8x32xf32>
    %162 = tpu.reciprocal %161 {approx = true} : vector<8x32xf32> -> vector<8x32xf32>
    %163 = arith.mulf %159, %162 : vector<8x32xf32>
    %c0_68 = arith.constant 0 : index
    %c0_69 = arith.constant 0 : index
    %164 = vector.load %arg13[%c0_68, %c0_69] : memref<32x1xf32, #tpu.memory_space<vmem>>, vector<32x1xf32>
    %cst_70 = arith.constant dense<0.000000e+00> : vector<8x1xf32>
    %165 = tpu.matmul %163, %164, %cst_70 {dimension_numbers = #tpu.dot_dimension_numbers<[1], [0], [0], [1], [0, 0, 1, 1], [], []>} : vector<8x32xf32>, vector<32x1xf32>, vector<8x1xf32> -> vector<8x1xf32>
    %c0_71 = arith.constant 0 : index
    %c0_72 = arith.constant 0 : index
    %166 = vector.load %arg14[%c0_71, %c0_72] : memref<1x1xf32, #tpu.memory_space<vmem>>, vector<1x1xf32>
    %167 = vector.broadcast %166 : vector<1x1xf32> to vector<8x1xf32>
    %168 = arith.addf %165, %167 : vector<8x1xf32>
    %169 = math.tanh %168 : vector<8x1xf32>
    %170 = math.sqrt %118 : vector<8x1xf32>
    %171 = tpu.concatenate %169, %103, %170, %120 in 1 : vector<8x1xf32>, vector<8x1xf32>, vector<8x1xf32>, vector<8x1xf32> -> vector<8x4xf32>
    %c0_73 = arith.constant 0 : index
    %c0_74 = arith.constant 0 : index
    %172 = vector.load %arg15[%c0_73, %c0_74] : memref<8x4xf32, #tpu.memory_space<vmem>>, vector<8x4xf32>
    tpu.vector_store %arg15[%c0_73, %c0_74], %171 {strides = array<i32>} : memref<8x4xf32, #tpu.memory_space<vmem>>, vector<8x4xf32>,
    return
  }
  func.func @transform_0(%arg0: i32) -> (i32, i32) {
    %c0_i32 = arith.constant 0 : i32
    %c0_i32_0 = arith.constant 0 : i32
    return %arg0, %c0_i32 : i32, i32
  }
  func.func @transform_1(%arg0: i32) -> (i32, i32) {
    %c0_i32 = arith.constant 0 : i32
    %c0_i32_0 = arith.constant 0 : i32
    return %arg0, %c0_i32 : i32, i32
  }
  func.func @transform_2(%arg0: i32) -> (i32, i32) {
    %c0_i32 = arith.constant 0 : i32
    %c0_i32_0 = arith.constant 0 : i32
    %c0_i32_1 = arith.constant 0 : i32
    return %c0_i32, %c0_i32_0 : i32, i32
  }
  func.func @transform_3(%arg0: i32) -> (i32, i32) {
    %c0_i32 = arith.constant 0 : i32
    %c0_i32_0 = arith.constant 0 : i32
    %c0_i32_1 = arith.constant 0 : i32
    return %c0_i32, %c0_i32_0 : i32, i32
  }
  func.func @transform_4(%arg0: i32) -> (i32, i32) {
    %c0_i32 = arith.constant 0 : i32
    %c0_i32_0 = arith.constant 0 : i32
    %c0_i32_1 = arith.constant 0 : i32
    return %c0_i32, %c0_i32_0 : i32, i32
  }
  func.func @transform_5(%arg0: i32) -> (i32, i32) {
    %c0_i32 = arith.constant 0 : i32
    %c0_i32_0 = arith.constant 0 : i32
    %c0_i32_1 = arith.constant 0 : i32
    return %c0_i32, %c0_i32_0 : i32, i32
  }
  func.func @transform_6(%arg0: i32) -> (i32, i32) {
    %c0_i32 = arith.constant 0 : i32
    %c0_i32_0 = arith.constant 0 : i32
    %c0_i32_1 = arith.constant 0 : i32
    return %c0_i32, %c0_i32_0 : i32, i32
  }
  func.func @transform_7(%arg0: i32) -> (i32, i32) {
    %c0_i32 = arith.constant 0 : i32
    %c0_i32_0 = arith.constant 0 : i32
    %c0_i32_1 = arith.constant 0 : i32
    return %c0_i32, %c0_i32_0 : i32, i32
  }
  func.func @transform_8(%arg0: i32) -> (i32, i32) {
    %c0_i32 = arith.constant 0 : i32
    %c0_i32_0 = arith.constant 0 : i32
    %c0_i32_1 = arith.constant 0 : i32
    return %c0_i32, %c0_i32_0 : i32, i32
  }
  func.func @transform_9(%arg0: i32) -> (i32, i32) {
    %c0_i32 = arith.constant 0 : i32
    %c0_i32_0 = arith.constant 0 : i32
    %c0_i32_1 = arith.constant 0 : i32
    return %c0_i32, %c0_i32_0 : i32, i32
  }
  func.func @transform_10(%arg0: i32) -> (i32, i32) {
    %c0_i32 = arith.constant 0 : i32
    %c0_i32_0 = arith.constant 0 : i32
    %c0_i32_1 = arith.constant 0 : i32
    return %c0_i32, %c0_i32_0 : i32, i32
  }
  func.func @transform_11(%arg0: i32) -> (i32, i32) {
    %c0_i32 = arith.constant 0 : i32
    %c0_i32_0 = arith.constant 0 : i32
    %c0_i32_1 = arith.constant 0 : i32
    return %c0_i32, %c0_i32_0 : i32, i32
  }
  func.func @transform_12(%arg0: i32) -> (i32, i32) {
    %c0_i32 = arith.constant 0 : i32
    %c0_i32_0 = arith.constant 0 : i32
    %c0_i32_1 = arith.constant 0 : i32
    return %c0_i32, %c0_i32_0 : i32, i32
  }
  func.func @transform_13(%arg0: i32) -> (i32, i32) {
    %c0_i32 = arith.constant 0 : i32
    %c0_i32_0 = arith.constant 0 : i32
    %c0_i32_1 = arith.constant 0 : i32
    return %c0_i32, %c0_i32_0 : i32, i32
  }
  func.func @transform_14(%arg0: i32) -> (i32, i32) {
    %c0_i32 = arith.constant 0 : i32
    %c0_i32_0 = arith.constant 0 : i32
    return %arg0, %c0_i32 : i32, i32
  }
}

</mosaic_0001>

<bundles_post_ra>
// kernel: tpu_custom_call.1
= control target key start
LH: loop header
LB: loop body
LE: loop exit
PB: predicated region body
PF: predicated region fallthrough
CT: control target
= control target key end

     0   :  { %v822_v0 = vmov 0.0   ;;  %vm823_vm0 = vmmov 0   ;;  %vm90_vm4 = vcmask 261120   ;;  %v824_v19 = vmov 0   ;;  %s1112_s2 = inlined_call_operand.vmem [shape: bf16[32,128], index: 2, kind: input, shape index: {}]   ;;  %s1113_s0 = inlined_call_operand.vmem [shape: f32[8,32], index: 0, kind: input, shape index: {}]   ;;  %s1114_s3 = inlined_call_operand.vmem [shape: f32[1,128], index: 3, kind: input, shape index: {}]   ;;  %s1115_s6 = inlined_call_operand.vmem [shape: bf16[128,192], index: 6, kind: input, shape index: {}]   ;;  %s1116_s8 = inlined_call_operand.vmem [shape: f32[192,8], index: 8, kind: input, shape index: {}]   ;;  %s1117_s4 = inlined_call_operand.vmem [shape: f32[1,128], index: 4, kind: input, shape index: {}]   ;;  %s1118_s5 = inlined_call_operand.vmem [shape: f32[1,128], index: 5, kind: input, shape index: {}]   ;;  %s1119_s7 = inlined_call_operand.vmem [shape: f32[1,192], index: 7, kind: input, shape index: {}]   ;;  %s1120_s9 = inlined_call_operand.vmem [shape: f32[1,8], index: 9, kind: input, shape index: {}]   ;;  %s1121_s1 = inlined_call_operand.vmem [shape: f32[8,1], index: 1, kind: input, shape index: {}]   ;;  %s1122_s12 = inlined_call_operand.vmem [shape: f32[32,1], index: 12, kind: input, shape index: {}]   ;;  %s1123_s13 = inlined_call_operand.<no memory space> [shape: f32[1,1], index: 13, kind: input, shape index: {}]   ;;  %s1124_s10 = inlined_call_operand.vmem [shape: f32[3,32], index: 10, kind: input, shape index: {}]   ;;  %s1125_s11 = inlined_call_operand.vmem [shape: f32[1,32], index: 11, kind: input, shape index: {}]   ;;  %s1126_s14 = inlined_call_operand.vmem [shape: f32[8,4], index: 14, kind: output, shape index: {}]  }
   0x1   :  { %692 = vmatprep.subr.bf16.mxu1 %v822_v0  ;;  %v766_v1 = vld [vmem:[%s1112_s2] sm:$0xff]   ;;  %696 = vmatprep.mubr.msk.bf16.mxu1 %vm823_vm0, %v822_v0  ;;  %v767_v2 = vld [vmem:[%s1112_s2 + $0x8] sm:$0xff]   ;;  %v773_v21 = vld [vmem:[%s1115_s6 + $0x14] ss:$8 sps:$4 sm:$0xff]   ;;  %v825_v35 = vmov 0.0|0.0   ;;  %vm373_vm5 = vcmask 523264  }
   0x2   :  { %693 = vmatpush3.bf16.msra.mxu1 %v766_v1  ;;  %v50_v3 = vld [vmem:[%s1113_s0] sm:$0xff]  ;;  %762 = vset.pattern.permute.xlu0 %v824_v19  ;;  %v771_v22 = vld [vmem:[%s1115_s6 + $0x10] ss:$8 sps:$4 sm:$0xff]   ;;  %v779_v25 = vld [vmem:[%s1115_s6 + $0x34] ss:$8 sps:$4 sm:$0xff]   ;;  %vm637_vm12 = vcmask 7168  }
   0x3   :  { %694 = vmatprep.subr.bf16.mxu1 %v822_v0  ;;  %vm51_vm1 = vcmp.ne.f32.partialorder %v50_v3, %v50_v3  ;;  %v650_v8 = vld [vmem:[%s1114_s3] ss:$0 sm:$0xff]  ;;  %v770_v20 = vld [vmem:[%s1115_s6 + $0x4] ss:$8 sps:$4 sm:$0xff]   ;;  %v777_v26 = vld [vmem:[%s1115_s6 + $0x30] ss:$8 sps:$4 sm:$0xff]   ;;  %711 = vmatprep.subr.bf16.mxu0 %v825_v35 }
   0x4   :  { %v52_v4 = vsel %vm51_vm1, 0.0, %v50_v3  ;;  %v768_v18 = vld [vmem:[%s1115_s6] ss:$8 sps:$4 sm:$0xff]   ;;  %v776_v23 = vld [vmem:[%s1115_s6 + $0x24] ss:$8 sps:$4 sm:$0xff]   ;;  %v344_v38 = vld [vmem:[%s1116_s8 + $0x10] sm:$0xff] }
   0x5   :  { %vm53_vm2 = vcmp.eq.f32.partialorder %v52_v4, inf  ;;  %v774_v24 = vld [vmem:[%s1115_s6 + $0x20] ss:$8 sps:$4 sm:$0xff]   ;;  %v782_v27 = vld [vmem:[%s1115_s6 + $0x44] ss:$8 sps:$4 sm:$0xff]   ;;  %v345_v40 = vld [vmem:[%s1116_s8 + $0x18] sm:$0xff] }
   0x6   :  { %695 = vmatpush3.bf16.msra.mxu1 %v767_v2  ;;  %v54_v5 = vsel %vm53_vm2, 5.0, %v52_v4  ;;  %v780_v28 = vld [vmem:[%s1115_s6 + $0x40] ss:$8 sps:$4 sm:$0xff]   ;;  %v785_v29 = vld [vmem:[%s1115_s6 + $0x54] ss:$8 sps:$4 sm:$0xff]   ;;  %v715_v41 = vpack.c.bf16 %v345_v40, %v344_v38  ;;  %vm639_vm13 = vcmask 15360  }
   0x7   :  { %vm55_vm3 = vcmp.eq.f32.partialorder %v54_v5, -inf  ;;  %281 = vmatprep.subr.bf16.mxu1 %v770_v20  ;;  %v783_v30 = vld [vmem:[%s1115_s6 + $0x50] ss:$8 sps:$4 sm:$0xff]   ;;  %v788_v31 = vld [vmem:[%s1115_s6 + $0x64] ss:$8 sps:$4 sm:$0xff]   ;;  %vm641_vm14 = vcmask 23552  }
   0x8   :  { %v56_v6 = vsel %vm55_vm3, -5.0, %v54_v5  ;;  %v786_v32 = vld [vmem:[%s1115_s6 + $0x60] ss:$8 sps:$4 sm:$0xff]   ;;  %v791_v33 = vld [vmem:[%s1115_s6 + $0x74] ss:$8 sps:$4 sm:$0xff]   ;;  %vm643_vm15 = vcmask 31744  }
   0x9   :  { %v66_v7 = vpack.c.bf16 %v56_v6, %v56_v6  ;;  %v789_v34 = vld [vmem:[%s1115_s6 + $0x70] ss:$8 sps:$4 sm:$0xff]   ;;  %v342_v36 = vld [vmem:[%s1116_s8] sm:$0xff]  ;;  %v343_v37 = vld [vmem:[%s1116_s8 + $0x8] sm:$0xff] }
   0xa   :  { %v712_v39 = vpack.c.bf16 %v343_v37, %v342_v36  ;;  %v654_v46 = vld [vmem:[%s1117_s4] ss:$0 sm:$0xff]  ;;  %v347_v63 = vld [vmem:[%s1116_s8 + $0x28] sm:$0xff]  ;;  %v348_v2 = vld [vmem:[%s1116_s8 + $0x30] sm:$0xff]  ;;  %s830_s4 = smov 1  }
   0xb   :  { %697 = vmatmul.mubr.msk.bf16.vlgmr.msra.gmra.mrb[0].mxu1 %vm90_vm4, %v66_v7  ;;  %v655_v48 = vld [vmem:[%s1118_s5] ss:$0 sm:$0xff]  ;;  %v351_v5 = vld [vmem:[%s1116_s8 + $0x48] sm:$0xff]  ;;  %v352_v7 = vld [vmem:[%s1116_s8 + $0x50] sm:$0xff] }
   0xc   :  { %313 = vmatprep.mubr.bf16.mxu1 %v824_v19  ;;  %282 = vmatpush1.bf16.msra.mxu1 %v768_v18  ;;  %v346_v62 = vld [vmem:[%s1116_s8 + $0x20] sm:$0xff]  ;;  %v360_v19 = vld [vmem:[%s1116_s8 + $0x90] sm:$0xff]  ;;  %v361_v20 = vld [vmem:[%s1116_s8 + $0x98] sm:$0xff] }
   0xd   :  { %283 = vmatprep.subr.bf16.mxu1 %v773_v21  ;;  %713 = vmatpush1.bf16.msra.mxu0 %v712_v39  ;;  %v718_v1 = vpack.c.bf16 %v347_v63, %v346_v62  ;;  %v350_v4 = vld [vmem:[%s1116_s8 + $0x40] sm:$0xff]  ;;  %v826_v62 = vmov 1  }
   0xe   :  { %714 = vmatprep.subr.bf16.mxu0 %v825_v35  ;;  %v724_v6 = vpack.c.bf16 %v351_v5, %v350_v4  ;;  %v362_v21 = vld [vmem:[%s1116_s8 + $0xa0] sm:$0xff]  ;;  %763 = vset.pattern.permute.xlu1 %v826_v62 }
   0xf   :  { %v675_v63 = vld [vmem:[%s1120_s9] ss:$0 sm:$0xff]  ;;  %s828_s9 = smov 2  }
  0x10   :  { %284 = vmatpush1.bf16.msra.mxu1 %v771_v22  ;;  %v739_v22 = vpack.c.bf16 %v361_v20, %v360_v19  ;;  %v680_v62 = vld [vmem:[%s1125_s11] ss:$0 sm:$0xff] }
  0x11   :  { %285 = vmatprep.subr.bf16.mxu1 %v776_v23  ;;  %716 = vmatpush1.bf16.msra.mxu0 %v715_v41  ;;  %v363_v23 = vld [vmem:[%s1116_s8 + $0xa8] sm:$0xff] }
  0x12   :  { %717 = vmatprep.subr.bf16.mxu0 %v825_v35 }
  0x14   :  { %286 = vmatpush1.bf16.msra.mxu1 %v774_v24  ;;  %v742_v24 = vpack.c.bf16 %v363_v23, %v362_v21 }
  0x15   :  { %287 = vmatprep.subr.bf16.mxu1 %v779_v25  ;;  %719 = vmatpush1.bf16.msra.mxu0 %v718_v1  ;;  %v364_v25 = vld [vmem:[%s1116_s8 + $0xb0] sm:$0xff] }
  0x16   :  { %720 = vmatprep.subr.bf16.mxu0 %v825_v35 }
  0x18   :  { %288 = vmatpush1.bf16.msra.mxu1 %v777_v26  ;;  %v365_v26 = vld [vmem:[%s1116_s8 + $0xb8] sm:$0xff] }
  0x19   :  { %289 = vmatprep.subr.bf16.mxu1 %v782_v27  ;;  %v745_v27 = vpack.c.bf16 %v365_v26, %v364_v25  ;;  %v829_v25 = vmov 2  }
  0x1c   :  { %290 = vmatpush1.bf16.msra.mxu1 %v780_v28  ;;  %v191_v28 = vlaneseq }
  0x1d   :  { %291 = vmatprep.subr.bf16.mxu1 %v785_v29 }
  0x1e   :  { %v1064_v29 = vshrl.u32 %v191_v28, 7 }
  0x20   :  { %292 = vmatpush1.bf16.msra.mxu1 %v783_v30  ;;  %v193_v30 = vsub.s32 0, %v1064_v29 }
  0x21   :  { %293 = vmatprep.subr.bf16.mxu1 %v788_v31  ;;  %v189_v31 = vld [vmem:[%s1119_s7] sm:$0x3] }
  0x24   :  { %294 = vmatpush1.bf16.msra.mxu1 %v786_v32  ;;  %v197_v32 = vsub.s32 1, %v1064_v29 }
  0x25   :  { %295 = vmatprep.subr.bf16.mxu1 %v791_v33  ;;  %v194_v33 = vrot.slane %v189_v31, %v193_v30 }
  0x28   :  { %296 = vmatpush1.bf16.msra.mxu1 %v789_v34  ;;  %v198_v34 = vrot.slane %v189_v31, %v197_v32 }
  0x29   :  { %747 = vmatprep.subr.bf16.mxu1 %v825_v35 }
  0xde   :  { %v128_v9 = vpop.f32.mrb[0].mxu1 }
  0xdf   :  { %v129_v10 = vadd.f32 %v650_v8, %v128_v9  ;;  %v698_v11 = vpop.f32.mrb[1].mxu1  ;;  %v353_v8 = vld [vmem:[%s1116_s8 + $0x58] sm:$0xff] }
  0xe0   :  { %v131_v12 = vpop.f32.mrb[2].mxu1  ;;  %v727_v9 = vpack.c.bf16 %v353_v8, %v352_v7  ;;  %v355_v11 = vld [vmem:[%s1116_s8 + $0x68] sm:$0xff]  ;;  %v57_v8 = vld [vmem:[%s1121_s1] sm:$0xff]  ;;  %s827_s1 = smov 127  }
  0xe1   :  { %134 = vadd.xlane.f32.xlu0 %v129_v10  ;;  %v699_v13 = vpop.f32.mrb[3].mxu1  ;;  %vm58_vm6 = vcmp.ne.f32.partialorder %v57_v8, %v57_v8 }
  0xe2   :  { %v356_v13 = vld [vmem:[%s1116_s8 + $0x70] sm:$0xff] }
 0x16e   :  { %v135_v14 = vpop.xlane.xlu0 %134 }
 0x16f   :  { %v137_v15 = vmul.f32 0.0078125, %v135_v14  ;;  %v357_v14 = vld [vmem:[%s1116_s8 + $0x78] sm:$0xff] }
 0x171   :  { %v138_v16 = vsub.f32 %v129_v10, %v137_v15  ;;  %v354_v10 = vld [vmem:[%s1116_s8 + $0x60] sm:$0xff]  ;;  %v733_v15 = vpack.c.bf16 %v357_v14, %v356_v13 }
 0x172   :  { %v730_v12 = vpack.c.bf16 %v355_v11, %v354_v10  ;;  %v59_v11 = vsel %vm58_vm6, 0.0, %v57_v8 }
 0x173   :  { %v139_v17 = vmul.f32 %v138_v16, %v138_v16  ;;  %vm60_vm7 = vcmp.eq.f32.partialorder %v59_v11, inf }
 0x175   :  { %140 = vadd.xlane.f32.xlu0 %v139_v17  ;;  %v359_v17 = vld [vmem:[%s1116_s8 + $0x88] sm:$0xff] }
 0x202   :  { %v141_v42 = vpop.xlane.xlu0 %140 }
 0x203   :  { %v142_v43 = vmul.f32 0.0078125, %v141_v42 }
 0x205   :  { %v143_v44 = vadd.f32 1e-05, %v142_v43 }
 0x207   :  { %792 = vrsqrt.f32 %v143_v44 }
 0x211   :  { %v793_v45 = vpop.eup %792 }
 0x212   :  { %v145_v47 = vmul.f32 %v793_v45, %v138_v16  ;;  %v358_v16 = vld [vmem:[%s1116_s8 + $0x80] sm:$0xff] }
 0x213   :  { %v736_v18 = vpack.c.bf16 %v359_v17, %v358_v16 }
 0x214   :  { %v153_v49 = vmul.f32 %v654_v46, %v145_v47 }
 0x216   :  { %v161_v50 = vadd.f32 %v655_v48, %v153_v49 }
 0x218   :  { %v162_v51 = vmin.f32 %v161_v50, 20.0 }
 0x21a   :  { %v163_v52 = vmul.f32 1.442695, %v162_v51 }
 0x21c   :  { %794 = vpow2.f32 %v163_v52 }
 0x226   :  { %v795_v53 = vpop.eup %794 }
 0x227   :  { %v165_v54 = vadd.f32 1.0, %v795_v53 }
 0x229   :  { %v166_v55 = vmul.f32 %v165_v54, %v165_v54 }
 0x22b   :  { %v169_v56 = vadd.f32 1.0, %v166_v55  ;;  %v656_v57 = vadd.f32 -1.0, %v166_v55 }
 0x22d   :  { %796 = vrcp.f32 %v169_v56  ;;  %v168_v58 = vmul.f32 %v656_v57, %v161_v50 }
 0x237   :  { %v797_v59 = vpop.eup %796 }
 0x238   :  { %v171_v60 = vmul.f32 %v797_v59, %v168_v58 }
 0x23a   :  { %v172_v61 = vpack.c.bf16 %v171_v60, %v171_v60 }
 0x23c   :  { %314 = vmatmul.mubr.bf16.vlgmr.msra.gmra.mrb[4].mxu1 %v172_v61 }
 0x23d   :  { %708 = vmatprep.mubr.msk.f32.mxu1 %vm823_vm0, %v822_v0  ;;  %v349_v0 = vld [vmem:[%s1116_s8 + $0x38] sm:$0xff] }
 0x23e   :  { %v721_v3 = vpack.c.bf16 %v349_v0, %v348_v2 }
 0x240   :  { %722 = vmatpush1.bf16.msra.mxu0 %v721_v3 }
 0x241   :  { %723 = vmatprep.subr.bf16.mxu0 %v825_v35 }
 0x244   :  { %725 = vmatpush1.bf16.msra.mxu0 %v724_v6 }
 0x245   :  { %726 = vmatprep.subr.bf16.mxu0 %v825_v35 }
 0x248   :  { %728 = vmatpush1.bf16.msra.mxu0 %v727_v9 }
 0x249   :  { %729 = vmatprep.subr.bf16.mxu0 %v825_v35 }
 0x24c   :  { %731 = vmatpush1.bf16.msra.mxu0 %v730_v12 }
 0x24d   :  { %732 = vmatprep.subr.bf16.mxu0 %v825_v35 }
 0x250   :  { %734 = vmatpush1.bf16.msra.mxu0 %v733_v15 }
 0x251   :  { %735 = vmatprep.subr.bf16.mxu0 %v825_v35 }
 0x254   :  { %737 = vmatpush1.bf16.msra.mxu0 %v736_v18  ;;  %v61_v18 = vsel %vm60_vm7, 1.0, %v59_v11 }
 0x255   :  { %738 = vmatprep.subr.bf16.mxu0 %v825_v35  ;;  %vm62_vm9 = vcmp.eq.f32.partialorder %v61_v18, -inf }
 0x258   :  { %740 = vmatpush1.bf16.msra.mxu0 %v739_v22  ;;  %v63_v22 = vsel %vm62_vm9, -1.0, %v61_v18 }
 0x259   :  { %741 = vmatprep.subr.bf16.mxu0 %v825_v35 }
 0x25c   :  { %743 = vmatpush1.bf16.msra.mxu0 %v742_v24  ;;  %v649_v24 = vclamps-f32 %v63_v22, 5.0 }
 0x25d   :  { %744 = vmatprep.subr.bf16.mxu0 %v825_v35 }
 0x260   :  { %746 = vmatpush1.bf16.msra.mxu0 %v745_v27 }
 0x30f   :  { %v315_v36 = vpop.f32.mrb[4].mxu1 }
 0x310   :  { %v316_v37 = vadd.f32 %v315_v36, %v194_v33  ;;  %v317_v38 = vpop.f32.mrb[5].mxu1 }
 0x311   :  { %v318_v39 = vadd.f32 %v317_v38, %v198_v34  ;;  %v319_v40 = vpop.f32.mrb[6].mxu1 }
 0x312   :  { %v322_v41 = vmin.f32 %v316_v37, 20.0  ;;  %v320_v42 = vpop.f32.mrb[7].mxu1 }
 0x313   :  { %v323_v43 = vmin.f32 %v318_v39, 20.0 }
 0x314   :  { %v324_v44 = vmul.f32 1.442695, %v322_v41 }
 0x315   :  { %v326_v45 = vmul.f32 1.442695, %v323_v43 }
 0x316   :  { %798 = vpow2.f32 %v324_v44  ;;  %v533_v44 = vld [vmem:[%s1122_s12] sm:$0xff] }
 0x317   :  { %800 = vpow2.f32 %v326_v45  ;;  %v534_v45 = vld [vmem:[%s1122_s12 + $0x8] sm:$0xff] }
 0x320   :  { %v799_v46 = vpop.eup %798 }
 0x321   :  { %v801_v47 = vpop.eup %800  ;;  %v328_v48 = vadd.f32 1.0, %v799_v46  ;;  %v748_v46 = vpack.c.bf16 %v534_v45, %v533_v44 }
 0x322   :  { %v329_v49 = vadd.f32 1.0, %v801_v47  ;;  %v535_v47 = vld [vmem:[%s1122_s12 + $0x10] sm:$0xff] }
 0x323   :  { %v330_v50 = vmul.f32 %v328_v48, %v328_v48  ;;  %749 = vmatpush3.bf16.msra.mxu1 %v748_v46  ;;  %v536_v48 = vld [vmem:[%s1122_s12 + $0x18] sm:$0xff] }
 0x324   :  { %v331_v51 = vmul.f32 %v329_v49, %v329_v49  ;;  %750 = vmatprep.subr.bf16.mxu1 %v825_v35  ;;  %v751_v49 = vpack.c.bf16 %v536_v48, %v535_v47  ;;  %v511_v35 = vsub.s32 2, %v1064_v29 }
 0x325   :  { %v336_v52 = vadd.f32 1.0, %v330_v50  ;;  %v673_v55 = vadd.f32 -1.0, %v330_v50  ;;  %v19_v50 = vstv %s1123_s13 }
 0x326   :  { %v337_v53 = vadd.f32 1.0, %v331_v51  ;;  %v674_v54 = vadd.f32 -1.0, %v331_v51  ;;  %20 = vst [vmem:[#allocation2] sm:$0x1] %v19_v50  ;;  %v483_v51 = vld [vmem:[%s1124_s10] sm:$0x7] }
 0x327   :  { %802 = vrcp.f32 %v336_v52  ;;  %v334_v59 = vmul.f32 %v673_v55, %v316_v37  ;;  %752 = vmatpush3.bf16.msra.mxu1 %v751_v49  ;;  %v512_v55 = vrot.slane %v483_v51, %v511_v35 }
 0x328   :  { %804 = vrcp.f32 %v337_v53  ;;  %v335_v57 = vmul.f32 %v674_v54, %v318_v39  ;;  %v501_v53 = vrot.slane %v483_v51, %v197_v32  ;;  %v492_v54 = vrot.slane %v483_v51, %v193_v30 }
 0x32d   :  { %v682_v8 = vld [vmem:[#allocation2] ss:$0 sm:$0xff] }
 0x331   :  { %v803_v56 = vpop.eup %802 }
 0x332   :  { %v805_v58 = vpop.eup %804  ;;  %v340_v61 = vmul.f32 %v803_v56, %v334_v59 }
 0x333   :  { %v341_v60 = vmul.f32 %v805_v58, %v335_v57 }
 0x335   :  { %676 = vmatprep.mubr.msk.f32.mxu0 %vm373_vm5, %v341_v60 }
 0x336   :  { %442 = vmatmul.mubr.f32.vlgmr.msra.gmra.mrb[0].mxu0 %v340_v61 }
 0x409   :  { %v443_v1 = vpop.f32.mrb[0].mxu0 }
 0x40a   :  { %v444_v2 = vadd.f32 %v675_v63, %v443_v1  ;;  %v445_v0 = vpop.f32.mrb[1].mxu0 }
 0x40c   :  { %v450_v3 = vand.u32 2147483647, %v444_v2  ;;  %v449_v16 = vmax.f32 %v444_v2, 0.0  ;;  %v677_v37 = vclamps-f32 %v444_v2, 5.0 }
 0x40e   :  { %v451_v4 = vsub.f32 0.0, %v450_v3 }
 0x410   :  { %v452_v5 = vmul.f32 1.442695, %v451_v4 }
 0x412   :  { %806 = vpow2.f32 %v452_v5 }
 0x41c   :  { %v807_v6 = vpop.eup %806 }
 0x41d   :  { %v454_v7 = vadd.f32 1.0, %v807_v6  ;;  %v457_v9 = vmul.f32 -0.5, %v807_v6  ;;  %v460_v12 = vand.u32 2147483647, %v807_v6 }
 0x41f   :  { %808 = vlog2.f32 %v454_v7  ;;  %v458_v10 = vadd.f32 1.0, %v457_v9  ;;  %vm461_vm8 = vcmp.lt.f32.partialorder %v460_v12, 0.0004427343 }
 0x420   :  { %810 = vtanh.f32 %v444_v2 }
 0x421   :  { %v459_v15 = vmul.f32 %v807_v6, %v458_v10 }
 0x429   :  { %v809_v13 = vpop.eup %808 }
 0x42a   :  { %v456_v14 = vmul.f32 0.6931472, %v809_v13  ;;  %v811_v27 = vpop.eup %810 }
 0x42c   :  { %v462_v17 = vsel %vm461_vm8, %v459_v15, %v456_v14 }
 0x42d   :  { %v463_v19 = vadd.f32 %v462_v17, %v449_v16 }
 0x42f   :  { %v464_v20 = vadd.f32 1e-06, %v463_v19 }
 0x431   :  { %v465_v21 = vmax.f32 %v464_v20, 1e-06 }
 0x433   :  { %v466_v23 = vmin.f32 %v465_v21, 100.0 }
 0x435   :  { %469 = vrot.lane.b32.xlu1 %v466_v23, %s827_s1  ;;  %812 = vrsqrt.f32 %v466_v23  ;;  %vm620_vm10 = vcmp.eq.f32.partialorder %v466_v23, inf  ;;  %v623_v42 = vand.u32 2147483648, %v466_v23  ;;  %vm622_vm11 = vcmp.eq.f32.partialorder %v466_v23, 0.0 }
 0x439   :  { %477 = vrot.lane.b32.xlu1 %v649_v24, %s828_s9 }
 0x43d   :  { %495 = vperm.xlu1 %763, %v466_v23  }
 0x43f   :  { %v813_v33 = vpop.eup %812 }
 0x440   :  { %v619_v36 = vmul.f32 %v813_v33, %v466_v23 }
 0x441   :  { %764 = vset.pattern.permute.xlu1 %v829_v25 }
 0x442   :  { %v621_v40 = vsel %vm620_vm10, %v466_v23, %v619_v36 }
 0x443   :  { %v624_v43 = vsel %vm622_vm11, %v623_v42, %v621_v40 }
 0x4a7   :  { %v470_v26 = vpop.permute.xlu1 %469 }
 0x4a8   :  { %814 = vrcp.f32 %v470_v26 }
 0x4ab   :  { %v478_v28 = vpop.permute.xlu1 %477 }
 0x4ac   :  { %v480_v31 = vmul.f32 %v811_v27, %v478_v28 }
 0x4ae   :  { %v679_v34 = vclamps-f32 %v480_v31, 5.0 }
 0x4b0   :  { %506 = vperm.xlu1 %764, %v679_v34  }
 0x4b2   :  { %v815_v38 = vpop.eup %814 }
 0x4b3   :  { %v473_v39 = vmul.f32 %v815_v38, %v677_v37 }
 0x4b4   :  { %626 = vrot.lane.b32.xlu1 %v677_v37, %s830_s4 }
 0x4b5   :  { %v678_v41 = vclamps-f32 %v473_v39, 5.0 }
 0x4b7   :  { %486 = vperm.xlu0 %762, %v678_v41  }
 0x4b8   :  { %630 = vrot.lane.b32.xlu1 %v624_v43, %s830_s4 }
 0x4bb   :  { %765 = vset.pattern.permute.xlu0 %v829_v25 }
 0x4bc   :  { %634 = vrot.lane.b32.xlu1 %v811_v27, %s830_s4  ;;  %v496_v52 = vpop.permute.xlu1 %495 }
 0x4bd   :  { %v502_v58 = vmul.f32 %v501_v53, %v496_v52 }
 0x52f   :  { %v507_v56 = vpop.permute.xlu1 %506 }
 0x530   :  { %v513_v60 = vmul.f32 %v512_v55, %v507_v56 }
 0x533   :  { %v627_v12 = vpop.permute.xlu1 %626 }
 0x536   :  { %v487_v57 = vpop.permute.xlu0 %486 }
 0x537   :  { %v493_v59 = vmul.f32 %v492_v54, %v487_v57  ;;  %v631_v13 = vpop.permute.xlu1 %630 }
 0x539   :  { %v503_v61 = vadd.f32 %v502_v58, %v493_v59 }
 0x53b   :  { %v514_v63 = vadd.f32 %v513_v60, %v503_v61  ;;  %v635_v16 = vpop.permute.xlu1 %634 }
 0x53d   :  { %v522_v1 = vadd.f32 %v680_v62, %v514_v63 }
 0x53f   :  { %v523_v2 = vmin.f32 %v522_v1, 20.0 }
 0x541   :  { %v524_v0 = vmul.f32 1.442695, %v523_v2 }
 0x543   :  { %816 = vpow2.f32 %v524_v0 }
 0x54d   :  { %v817_v32 = vpop.eup %816 }
 0x54e   :  { %v526_v3 = vadd.f32 1.0, %v817_v32 }
 0x550   :  { %v527_v29 = vmul.f32 %v526_v3, %v526_v3 }
 0x552   :  { %v530_v30 = vadd.f32 1.0, %v527_v29  ;;  %v681_v4 = vadd.f32 -1.0, %v527_v29 }
 0x554   :  { %818 = vrcp.f32 %v530_v30  ;;  %v529_v5 = vmul.f32 %v681_v4, %v522_v1 }
 0x55e   :  { %v819_v6 = vpop.eup %818 }
 0x55f   :  { %v532_v7 = vmul.f32 %v819_v6, %v529_v5 }
 0x561   :  { %709 = vmatmul.mubr.msk.f32.vlgmr.msra.gmra.mrb[8].mxu1 %vm90_vm4, %v532_v7 }
 0x634   :  { %v613_v9 = vpop.f32.mrb[8].mxu1 }
 0x635   :  { %v614_v10 = vadd.f32 %v682_v8, %v613_v9  ;;  %v710_v11 = vpop.f32.mrb[9].mxu1 }
 0x637   :  { %820 = vtanh.f32 %v614_v10 }
 0x641   :  { %v821_v14 = vpop.eup %820 }
 0x642   :  { %v638_v15 = vsel %vm637_vm12, %v821_v14, %v627_v12 }
 0x643   :  { %v640_v17 = vsel %vm639_vm13, %v638_v15, %v631_v13 }
 0x644   :  { %v642_v18 = vsel %vm641_vm14, %v640_v17, %v635_v16 }
 0x645   :  { %644 = vst.msk [vmem:[%s1126_s14] sm:$0xff] %vm643_vm15, %v642_v18 }

</bundles_post_ra>
